<compile_context>
chip_gen: v7x
topology: tpu7x:2x2x1
jax: 0.10.0
libtpu: 0.0.40
codegen_flags: <defaults>
</compile_context>

<pallas_src>
import functools

import numpy as np
import jax
import jax.numpy as jnp
from jax import lax
from jax.experimental import pallas as pl
from jax.experimental.pallas import tpu as pltpu


# bf16 storage for the conv stack; accumulation stays f32 in-kernel.
COMPUTE_DTYPE = jnp.bfloat16
ACC_BYTES_TARGET = 64 * 1024      # per-chunk f32 accumulator target (stays in vregs)
MAX_CHUNKS = 24                   # bound on statically-unrolled chunk count
MIN_GRID_STEPS = 8                # >=2 grid steps per v7x TensorCore + pipelining


def _vmem_budgets():
    """(scoped VMEM limit, per-step block budget) per TPU generation."""
    kind = ""
    try:
        kind = jax.devices()[0].device_kind.lower()
    except Exception:
        pass
    if any(s in kind for s in ("v2", "v3")):
        return 12 * 2**20, 3 * 2**20
    if any(s in kind for s in ("v4", "v5", "v6")):
        # 128 MiB physical VMEM per TensorCore on v4/v5e/v5p/v6e.
        return 96 * 2**20, 16 * 2**20
    # v7x has 64 MiB per TensorCore; conservative default for unknown chips.
    return 48 * 2**20, 8 * 2**20


VMEM_LIMIT_BYTES, VMEM_BLOCK_BUDGET = _vmem_budgets()


def _compiler_params():
    return pltpu.CompilerParams(
        dimension_semantics=("parallel", "parallel"),
        vmem_limit_bytes=VMEM_LIMIT_BYTES)


def _run_chunks(fn, total, chunk):
    """Statically unrolled loop over lane chunks (all slice offsets static)."""
    c0 = 0
    while c0 < total:
        sz = min(chunk, total - c0)
        fn(c0, sz)
        c0 += sz


# ----------------------------------------------------------------------------
# Pallas kernel 1: 'same' KxK conv on an overscan-flattened row tile (chunked)
# ----------------------------------------------------------------------------
def _conv_overscan_kernel(w_ref, b_ref, x_ref, o_ref, *, K, R, L, relu, chunk):
    # w_ref : (K*K, Cout, Cin)        taps-major weights (bf16)
    # b_ref : (Cout, 1)               bias (f32)
    # x_ref : (1, 1, Cin, (TH+K)*R)   padded input slab, rows flattened (stride R)
    # o_ref : (1, 1, Cout, TH*R)
    cout = w_ref.shape[1]

    def one_chunk(c0, sz):
        acc = jnp.zeros((cout, sz), jnp.float32)       # lives in vregs
        for u in range(K):
            for v in range(K):
                d = c0 + u * R + v
                xs = x_ref[0, 0, :, d:d + sz]
                acc = acc + lax.dot_general(
                    w_ref[u * K + v], xs, (((1,), (0,)), ((), ())),
                    preferred_element_type=jnp.float32)
        acc = acc + b_ref[...]
        if relu:
            acc = jnp.maximum(acc, 0.0)
        o_ref[0, 0, :, c0:c0 + sz] = acc.astype(o_ref.dtype)

    _run_chunks(one_chunk, L, chunk)


# ----------------------------------------------------------------------------
# Pallas kernel 2: fused basicblock  (Conv3x3 -> ReLU -> Conv3x3) + residual
# ----------------------------------------------------------------------------
def _basicblock_kernel(w1_ref, b1_ref, w2_ref, b2_ref, mask_ref, x_ref,
                       o_ref, mid_ref, *, K, R, L, L_mid, chunk_mid, chunk_out):
    # x_ref    : (1, 1, C, (TH+5)*R)  input slab padded by 2 rows/cols (zeros)
    # mask_ref : (1, 1, (TH+2)*R)     1 where the conv1 output is a real pixel
    # mid_ref  : (C, (TH+3)*R)        VMEM scratch for ReLU(conv1) (bf16)
    c = w1_ref.shape[1]

    def mid_chunk(c0, sz):
        acc = jnp.zeros((c, sz), jnp.float32)
        for u in range(K):
            for v in range(K):
                d = c0 + u * R + v
                acc = acc + lax.dot_general(
                    w1_ref[u * K + v], x_ref[0, 0, :, d:d + sz],
                    (((1,), (0,)), ((), ())),
                    preferred_element_type=jnp.float32)
        acc = jnp.maximum(acc + b1_ref[...], 0.0)
        # PyTorch zero-pads conv2's input: zero the ring / out-of-image rows.
        acc = acc * mask_ref[0, :, c0:c0 + sz].astype(jnp.float32)
        mid_ref[:, c0:c0 + sz] = acc.astype(mid_ref.dtype)

    _run_chunks(mid_chunk, L_mid, chunk_mid)
    # Trailing scratch row only feeds cropped overscan lanes; keep it finite.
    mid_ref[:, L_mid:] = jnp.zeros((c, R), mid_ref.dtype)

    roff = (K - 1) * R + (K - 1)   # offset of the un-shifted pixel in the slab

    def out_chunk(c0, sz):
        acc = jnp.zeros((c, sz), jnp.float32)
        for u in range(K):
            for v in range(K):
                d = c0 + u * R + v
                acc = acc + lax.dot_general(
                    w2_ref[u * K + v], mid_ref[:, d:d + sz],
                    (((1,), (0,)), ((), ())),
                    preferred_element_type=jnp.float32)
        acc = acc + b2_ref[...]
        # residual read straight from the resident input slab
        acc = acc + x_ref[0, 0, :, c0 + roff:c0 + roff + sz].astype(jnp.float32)
        o_ref[0, 0, :, c0:c0 + sz] = acc.astype(o_ref.dtype)

    _run_chunks(out_chunk, L, chunk_out)


# ----------------------------------------------------------------------------
# Pallas kernel 3: pixelConv application (per-pixel 5x5 kernels, 3 colors)
# ----------------------------------------------------------------------------
def _pixel_apply_kernel(ker_ref, img_ref, o_ref, *, K, R, L, chunk):
    # ker_ref: (1, 1, 3*K*K, L)       channel order = tap*3 + color
    # img_ref: (1, 1, 3, (TH+K)*R)    zero-padded image slab (f32)
    def one_chunk(c0, sz):
        acc = jnp.zeros((3, sz), jnp.float32)
        for u in range(K):
            for v in range(K):
                t = u * K + v
                kt = ker_ref[0, 0, 3 * t:3 * t + 3, c0:c0 + sz].astype(jnp.float32)
                xt = img_ref[0, 0, :, c0 + u * R + v:c0 + u * R + v + sz]
                acc = acc + kt * xt.astype(jnp.float32)
        o_ref[0, 0, :, c0:c0 + sz] = acc.astype(o_ref.dtype)

    _run_chunks(one_chunk, L, chunk)


# ----------------------------------------------------------------------------
# Pallas kernel 4: depthwise 5x5 Gaussian blur (constant weights, pure VPU)
# ----------------------------------------------------------------------------
_GAUSS_2D = np.outer([1., 4., 6., 4., 1.], [1., 4., 6., 4., 1.]) / 256.0


def _gauss_blur_kernel(x_ref, o_ref, *, R, L, chunk):
    def one_chunk(c0, sz):
        acc = jnp.zeros((3, sz), jnp.float32)
        for u in range(5):
            for v in range(5):
                d = c0 + u * R + v
                acc = acc + float(_GAUSS_2D[u, v]) * x_ref[0, 0, :, d:d + sz]
        o_ref[0, 0, :, c0:c0 + sz] = acc.astype(o_ref.dtype)

    _run_chunks(one_chunk, L, chunk)


# ----------------------------------------------------------------------------
# Layout helpers (plain JAX / numpy glue)
# ----------------------------------------------------------------------------
def _pick_R(W, pad=2):
    """Row stride: round W+2*pad up to a multiple of 128 if waste <= 25%."""
    base = W + 2 * pad
    r = -(-base // 128) * 128
    return r if 4 * r <= 5 * base else base


def _chunk_lanes(cout, L):
    """Largest lane-chunk whose f32 accumulator stays ~in the vreg file."""
    c = (ACC_BYTES_TARGET // (4 * max(int(cout), 1))) // 128 * 128
    c = max(128, min(1024, c))
    return max(1, min(c, L))


def _pick_row_tile(H, R, cin, cout, extra, batch, mid_c=0):
    """Largest TH whose *double-buffered* per-step footprint fits the budget,
    whose chunk count stays statically unrollable, and which still yields
    >= MIN_GRID_STEPS grid steps."""
    item = jnp.dtype(COMPUTE_DTYPE).itemsize
    chunk = _chunk_lanes(max(cout, mid_c), 1 << 30)

    def fits(th):
        fin = 2 * (th + extra) * R * cin * item          # double-buffered input
        fout = 2 * th * R * cout * item                  # double-buffered output
        fmid = (th + 3) * R * mid_c * item               # fused-block VMEM scratch
        fw = 2 * 9 * cin * max(cout, mid_c, 1) * item    # weights (bound)
        if fin + fout + fmid + fw > VMEM_BLOCK_BUDGET:
            return False
        return (th + (2 if mid_c else 0)) * R <= MAX_CHUNKS * chunk

    th = max(1, H)
    while th > 1 and not fits(th):
        th = -(-th // 2)
    while th > 1 and batch * (-(-H // th)) < MIN_GRID_STEPS:
        th = -(-th // 2)
    return th


def _to_overscan_input(x, pad, extra, R, TH, nT, mode):
    """(B,C,H,W) -> (B,nT,C,(TH+extra)*R): padded row slabs, flattened
    lane-major so each conv tap is a static lane-shifted view in the kernel."""
    B, C, H, W = x.shape
    xp = jnp.pad(x, ((0, 0), (0, 0), (pad, pad), (pad, pad)), mode=mode)
    rows_total = nT * TH + extra
    xp = jnp.pad(xp, ((0, 0), (0, 0),
                      (0, rows_total - (H + 2 * pad)),
                      (0, R - (W + 2 * pad))))
    if nT == 1:
        slabs = xp[:, None]
    else:
        slabs = jnp.stack([xp[:, :, i * TH:i * TH + TH + extra, :]
                           for i in range(nT)], axis=1)
    return slabs.reshape(B, nT, C, (TH + extra) * R)


def _from_out_layout(y, H, W, R, TH, nT):
    """(B,nT,C,TH*R) -> (B,C,H,W): drop overscan columns / padded rows."""
    B, _, C, _ = y.shape
    y = y.reshape(B, nT, C, TH, R).transpose(0, 2, 1, 3, 4)
    return y.reshape(B, C, nT * TH, R)[:, :, :H, :W]


def _prep_w(w):
    K = w.shape[2]
    return (jnp.transpose(w, (2, 3, 0, 1))
            .reshape(K * K, w.shape[0], w.shape[1]).astype(COMPUTE_DTYPE))


def _prep_b(b):
    return b.reshape(-1, 1).astype(jnp.float32)


# ----------------------------------------------------------------------------
# Conv2d wrapper (PyTorch Conv2d semantics: cross-correlation, 'same', stride 1)
# ----------------------------------------------------------------------------
def conv2d(x, w, b, *, relu=False, R=None, TH=None, keep_overscan=False):
    B, Cin, H, W = x.shape
    Cout, Cin_w, K, K2 = w.shape
    assert Cin_w == Cin and K == K2
    p = K // 2
    E = K
    if R is None:
        R = _pick_R(W)
    assert R >= W + 2 * p
    if TH is None:
        TH = _pick_row_tile(H, R, Cin, Cout, E, B)
    nT = -(-H // TH)
    L = TH * R
    Lin = (TH + E) * R
    xs = _to_overscan_input(x.astype(COMPUTE_DTYPE), p, E, R, TH, nT, "constant")

    out = pl.pallas_call(
        functools.partial(_conv_overscan_kernel, K=K, R=R, L=L, relu=relu,
                          chunk=_chunk_lanes(Cout, L)),
        out_shape=jax.ShapeDtypeStruct((B, nT, Cout, L), COMPUTE_DTYPE),
        grid_spec=pltpu.PrefetchScalarGridSpec(
            num_scalar_prefetch=0,
            grid=(B, nT),
            in_specs=[
                pl.BlockSpec((K * K, Cout, Cin), lambda bb, tt: (0, 0, 0)),
                pl.BlockSpec((Cout, 1), lambda bb, tt: (0, 0)),
                pl.BlockSpec((1, 1, Cin, Lin), lambda bb, tt: (bb, tt, 0, 0)),
            ],
            out_specs=pl.BlockSpec((1, 1, Cout, L),
                                   lambda bb, tt: (bb, tt, 0, 0))),
        compiler_params=_compiler_params(),
    )(_prep_w(w), _prep_b(b), xs)
    if keep_overscan:
        return out, (H, W, R, TH, nT)
    return _from_out_layout(out, H, W, R, TH, nT)


# ----------------------------------------------------------------------------
# Fused basicblock wrapper
# ----------------------------------------------------------------------------
def _mid_mask(H, W, R, TH, nT):
    m = np.zeros((nT, TH + 2, R), np.float32)
    for t in range(nT):
        for r in range(TH + 2):
            orow = t * TH - 1 + r
            if 0 <= orow < H:
                m[t, r, 1:W + 1] = 1.0
    return jnp.asarray(m.reshape(nT, 1, (TH + 2) * R), dtype=COMPUTE_DTYPE)


def basic_block(x, w1, b1, w2, b2, *, TH=None):
    B, C, H, W = x.shape
    assert w1.shape == (C, C, 3, 3) and w2.shape == (C, C, 3, 3)
    K = 3
    pp = 2                       # combined padding of the two convs
    E = 2 * K - 1                # slab rows beyond TH (incl. +1 overscan row)
    R = _pick_R(W)
    if TH is None:
        TH = _pick_row_tile(H, R, C, C, E, B, mid_c=C)
    nT = -(-H // TH)
    L = TH * R
    L_mid = (TH + 2) * R
    Lin = (TH + E) * R
    xs = _to_overscan_input(x.astype(COMPUTE_DTYPE), pp, E, R, TH, nT, "constant")
    mask = _mid_mask(H, W, R, TH, nT)

    out = pl.pallas_call(
        functools.partial(_basicblock_kernel, K=K, R=R, L=L, L_mid=L_mid,
                          chunk_mid=_chunk_lanes(C, L_mid),
                          chunk_out=_chunk_lanes(C, L)),
        out_shape=jax.ShapeDtypeStruct((B, nT, C, L), COMPUTE_DTYPE),
        grid_spec=pltpu.PrefetchScalarGridSpec(
            num_scalar_prefetch=0,
            grid=(B, nT),
            in_specs=[
                pl.BlockSpec((K * K, C, C), lambda bb, tt: (0, 0, 0)),
                pl.BlockSpec((C, 1), lambda bb, tt: (0, 0)),
                pl.BlockSpec((K * K, C, C), lambda bb, tt: (0, 0, 0)),
                pl.BlockSpec((C, 1), lambda bb, tt: (0, 0)),
                pl.BlockSpec((1, 1, L_mid), lambda bb, tt: (tt, 0, 0)),
                pl.BlockSpec((1, 1, C, Lin), lambda bb, tt: (bb, tt, 0, 0)),
            ],
            out_specs=pl.BlockSpec((1, 1, C, L), lambda bb, tt: (bb, tt, 0, 0)),
            scratch_shapes=[pltpu.VMEM((C, L_mid + R), COMPUTE_DTYPE)]),
        compiler_params=_compiler_params(),
    )(_prep_w(w1), _prep_b(b1), _prep_w(w2), _prep_b(b2), mask, xs)
    return _from_out_layout(out, H, W, R, TH, nT)


# ----------------------------------------------------------------------------
# Gaussian blur (depthwise, replicate padding) / Laplacian pyramid
# ----------------------------------------------------------------------------
def gauss_blur(x):
    B, C, H, W = x.shape
    assert C == 3
    K, p, E = 5, 2, 5
    R = _pick_R(W)
    TH = _pick_row_tile(H, R, C, C, E, B)
    nT = -(-H // TH)
    L, Lin = TH * R, (TH + E) * R
    xs = _to_overscan_input(x.astype(jnp.float32), p, E, R, TH, nT, "edge")
    out = pl.pallas_call(
        functools.partial(_gauss_blur_kernel, R=R, L=L, chunk=_chunk_lanes(3, L)),
        out_shape=jax.ShapeDtypeStruct((B, nT, 3, L), jnp.float32),
        grid_spec=pltpu.PrefetchScalarGridSpec(
            num_scalar_prefetch=0,
            grid=(B, nT),
            in_specs=[pl.BlockSpec((1, 1, 3, Lin), lambda bb, tt: (bb, tt, 0, 0))],
            out_specs=pl.BlockSpec((1, 1, 3, L), lambda bb, tt: (bb, tt, 0, 0))),
        compiler_params=_compiler_params(),
    )(xs)
    return _from_out_layout(out, H, W, R, TH, nT)


def _bilinear_1d(n_in, n_out):
    if n_out == 1 or n_in == 1:
        i0 = np.zeros(n_out, np.int64)
        return i0, i0, jnp.zeros((n_out,), jnp.float32)
    src = np.arange(n_out) * (n_in - 1) / (n_out - 1)
    i0 = np.floor(src).astype(np.int64)
    i1 = np.minimum(i0 + 1, n_in - 1)
    return i0, i1, jnp.asarray((src - i0).astype(np.float32))


def bilinear_resize(x, out_h, out_w):
    """F.interpolate(mode='bilinear', align_corners=True) as 2-tap gather+lerp."""
    i0, i1, th = _bilinear_1d(x.shape[2], out_h)
    j0, j1, tw = _bilinear_1d(x.shape[3], out_w)
    th = th[None, None, :, None]
    x = x[:, :, i0, :] * (1.0 - th) + x[:, :, i1, :] * th
    return x[:, :, :, j0] * (1.0 - tw) + x[:, :, :, j1] * tw


def laplacian_pyramid(x, step=3):
    gaussians, laplacians = [x], []
    for _ in range(step - 1):
        cur = gaussians[-1]
        down = gauss_blur(cur)[:, :, ::2, ::2]
        up = gauss_blur(bilinear_resize(down, cur.shape[2], cur.shape[3]))
        laplacians.append(cur - up)
        gaussians.append(down)
    return gaussians, laplacians


def laplacian_reconstruction(x_lap, x_gau):
    up = gauss_blur(bilinear_resize(x_gau, x_lap.shape[2], x_lap.shape[3]))
    return up + x_lap


def pixel_unshuffle(x, r):   # Shuffle_d
    B, C, H, W = x.shape
    x = x.reshape(B, C, H // r, r, W // r, r)
    return x.transpose(0, 1, 3, 5, 2, 4).reshape(B, C * r * r, H // r, W // r)


def pixel_shuffle(x, r):     # nn.PixelShuffle
    B, C, H, W = x.shape
    x = x.reshape(B, C // (r * r), r, r, H, W)
    return x.transpose(0, 1, 4, 2, 5, 3).reshape(B, C // (r * r), H * r, W * r)


# ----------------------------------------------------------------------------
# pixelConv: three 3x3 convs predicting 3*25 per-pixel taps, applied to img
# ----------------------------------------------------------------------------
def _pixel_apply(ker_os, geom, img, K):
    H, W, R, TH, nT = geom
    B = img.shape[0]
    p, E = K // 2, K
    L, Lin = TH * R, (TH + E) * R
    img_s = _to_overscan_input(img.astype(jnp.float32), p, E, R, TH, nT, "constant")
    out = pl.pallas_call(
        functools.partial(_pixel_apply_kernel, K=K, R=R, L=L,
                          chunk=_chunk_lanes(3, L)),
        out_shape=jax.ShapeDtypeStruct((B, nT, 3, L), jnp.float32),
        grid_spec=pltpu.PrefetchScalarGridSpec(
            num_scalar_prefetch=0,
            grid=(B, nT),
            in_specs=[
                pl.BlockSpec((1, 1, 3 * K * K, L), lambda bb, tt: (bb, tt, 0, 0)),
                pl.BlockSpec((1, 1, 3, Lin), lambda bb, tt: (bb, tt, 0, 0)),
            ],
            out_specs=pl.BlockSpec((1, 1, 3, L), lambda bb, tt: (bb, tt, 0, 0))),
        compiler_params=_compiler_params(),
    )(ker_os, img_s)
    return _from_out_layout(out, H, W, R, TH, nT)


def pixel_conv(conv_params, feat, img, *, ksize=5):
    # TODO(synk): pixelConv internals not in the spec; follows the reference repo.
    B, Cf, H, W = feat.shape
    assert img.shape[2:] == (H, W)
    (w1, b1), (w2, b2), (w3, b3) = conv_params
    R = _pick_R(W)                               # shared by the convs + apply
    cmax = max(w1.shape[0], w2.shape[0], w3.shape[0])
    cinmax = max(w1.shape[1], w2.shape[1], w3.shape[1])
    TH = _pick_row_tile(H, R, cinmax, cmax, ksize, B)
    h = conv2d(feat, w1, b1, R=R, TH=TH)
    h = conv2d(h, w2, b2, R=R, TH=TH)
    # 75-channel per-pixel kernels stay in the conv's overscan output layout;
    # never re-materialised as (B,75,H,W) in HBM.
    ker_os, geom = conv2d(h, w3, b3, R=R, TH=TH, keep_overscan=True)
    return _pixel_apply(ker_os, geom, img, ksize)


# ----------------------------------------------------------------------------
# Parameters + KPN forward
# ----------------------------------------------------------------------------
def init_params(key, n_feats=64, n_blocks=16):
    keys = iter(jax.random.split(key, 64))

    def conv_init(cout, cin, k=3):
        fan = cin * k * k
        w = jax.random.normal(next(keys), (cout, cin, k, k), jnp.float32)
        return w / np.sqrt(fan), jnp.zeros((cout,), jnp.float32)

    return {
        'head': [conv_init(n_feats // 4, 3),
                 conv_init(n_feats // 16, n_feats // 4)],
        'backbone': {
            'first': conv_init(n_feats, n_feats),
            'blocks': [(conv_init(n_feats, n_feats), conv_init(n_feats, n_feats))
                       for _ in range(n_blocks)],
            'last': conv_init(n_feats, n_feats),
        },
        'branch_1': [conv_init(n_feats, n_feats // 16),
                     conv_init(n_feats, n_feats), conv_init(75, n_feats)],
        'branch_2': [conv_init(n_feats, n_feats // 4),
                     conv_init(n_feats, n_feats), conv_init(75, n_feats)],
        'branch_3': [conv_init(n_feats, n_feats),
                     conv_init(n_feats, n_feats), conv_init(75, n_feats)],
    }


def kpn_forward(x, params):
    gaussians, laplacians = laplacian_pyramid(x, step=3)
    lap_1, lap_2, gaussian_3 = laplacians[0], laplacians[1], gaussians[-1]

    # head: Conv(3->16) -> Conv(16->4) -> Shuffle_d(4)
    f = conv2d(x, *params['head'][0])
    f = conv2d(f, *params['head'][1])
    f = pixel_unshuffle(f, 4)                               # (B, 64, H/4, W/4)

    # backbone: Conv + 16 x fused (Conv-ReLU-Conv + skip) + Conv
    f = conv2d(f, *params['backbone']['first'])
    for (w1, b1), (w2, b2) in params['backbone']['blocks']:
        f = basic_block(f, w1, b1, w2, b2)
    f = conv2d(f, *params['backbone']['last'])

    out_1 = pixel_conv(params['branch_1'], pixel_shuffle(f, 4), lap_1)
    out_2 = pixel_conv(params['branch_2'], pixel_shuffle(f, 2), lap_2)
    out_3 = pixel_conv(params['branch_3'], f, gaussian_3)

    merge_x2 = laplacian_reconstruction(out_2, out_3)
    return laplacian_reconstruction(out_1, merge_x2)


# ----------------------------------------------------------------------------
# Pure-JAX references for self-checks (bf16-quantised to match storage)
# ----------------------------------------------------------------------------
def _q(a):
    return a.astype(COMPUTE_DTYPE).astype(jnp.float32)


def _conv_ref(x, w, b, relu=False):
    p = w.shape[2] // 2
    out = lax.conv_general_dilated(
        x, w, (1, 1), [(p, p), (p, p)],
        dimension_numbers=('NCHW', 'OIHW', 'NCHW'),
        precision=lax.Precision.HIGHEST)
    out = out + b[None, :, None, None]
    return jnp.maximum(out, 0.0) if relu else out


def _gauss_ref(x):
    w = np.zeros((3, 1, 5, 5), np.float32)
    w[:, 0] = _GAUSS_2D
    xp = jnp.pad(x, ((0, 0), (0, 0), (2, 2), (2, 2)), mode="edge")
    return lax.conv_general_dilated(
        xp, jnp.asarray(w), (1, 1), "VALID",
        dimension_numbers=('NCHW', 'OIHW', 'NCHW'),
        feature_group_count=3, precision=lax.Precision.HIGHEST)


def _pixel_conv_ref(conv_params, feat, img, ksize=5):
    (w1, b1), (w2, b2), (w3, b3) = conv_params
    h = _q(_conv_ref(_q(feat), _q(w1), b1))
    h = _q(_conv_ref(h, _q(w2), b2))
    ker = _q(_conv_ref(h, _q(w3), b3))
    B, _, H, W = img.shape
    p = ksize // 2
    imgp = jnp.pad(img, ((0, 0), (0, 0), (p, p), (p, p)))
    kr = ker.reshape(B, ksize * ksize, 3, H, W)
    out = jnp.zeros((B, 3, H, W), jnp.float32)
    for u in range(ksize):
        for v in range(ksize):
            out = out + kr[:, u * ksize + v] * imgp[:, :, u:u + H, v:v + W]
    return out


# ----------------------------------------------------------------------------
if __name__ == "__main__":
    key = jax.random.PRNGKey(0)
    k_x, k_p, k_t = jax.random.split(key, 3)
    tk = jax.random.split(k_t, 12)

    # 1) single conv, odd shape, forced row tiling + ReLU
    xt = jax.random.normal(tk[0], (2, 8, 7, 5), jnp.float32)
    wt = jax.random.normal(tk[1], (8, 8, 3, 3), jnp.float32) * 0.2
    bt = jax.random.normal(tk[2], (8,), jnp.float32) * 0.1
    got = np.asarray(conv2d(xt, wt, bt, relu=True, TH=3).astype(jnp.float32))
    ref = np.asarray(_conv_ref(_q(xt), _q(wt), bt, relu=True))
    np.testing.assert_allclose(got, ref, rtol=2e-2, atol=2e-2)

    # 2) wider conv exercising multiple lane chunks (incl. ragged tail)
    x2 = jax.random.normal(tk[3], (1, 8, 64, 64), jnp.float32)
    w2 = jax.random.normal(tk[4], (64, 8, 3, 3), jnp.float32) * 0.2
    b2 = jax.random.normal(tk[5], (64,), jnp.float32) * 0.1
    got = np.asarray(conv2d(x2, w2, b2, TH=32).astype(jnp.float32))
    ref = np.asarray(_conv_ref(_q(x2), _q(w2), b2))
    np.testing.assert_allclose(got, ref, rtol=2e-2, atol=2e-2)

    # 3) fused basicblock (conv-relu-conv + residual), tile-boundary masking
    w1b = jax.random.normal(tk[6], (8, 8, 3, 3), jnp.float32) * 0.2
    w2b = jax.random.normal(tk[7], (8, 8, 3, 3), jnp.float32) * 0.2
    b1b = jax.random.normal(tk[8], (8,), jnp.float32) * 0.1
    b2b = jnp.zeros((8,), jnp.float32)
    got = np.asarray(basic_block(xt, w1b, b1b, w2b, b2b, TH=3).astype(jnp.float32))
    mid = _q(jnp.maximum(_conv_ref(_q(xt), _q(w1b), b1b), 0.0))
    ref = np.asarray(_conv_ref(mid, _q(w2b), b2b) + _q(xt))
    np.testing.assert_allclose(got, ref, rtol=3e-2, atol=3e-2)

    # 4) depthwise Gaussian blur with replicate padding
    xg = jax.random.normal(tk[9], (2, 3, 9, 11), jnp.float32)
    np.testing.assert_allclose(np.asarray(gauss_blur(xg)), np.asarray(_gauss_ref(xg)),
                               rtol=1e-4, atol=1e-4)

    # 5) pixelConv (kernel prediction kept in overscan layout + 5x5 apply)
    feat_t = jax.random.normal(tk[10], (1, 4, 6, 5), jnp.float32)
    img_t = jax.random.normal(tk[11], (1, 3, 6, 5), jnp.float32)
    kb = jax.random.split(jax.random.PRNGKey(7), 4)
    bp = [
        (jax.random.normal(kb[0], (8, 4, 3, 3), jnp.float32) * 0.2,
         jax.random.normal(kb[1], (8,), jnp.float32) * 0.1),
        (jax.random.normal(kb[2], (8, 8, 3, 3), jnp.float32) * 0.2,
         jnp.zeros((8,), jnp.float32)),
        (jax.random.normal(kb[3], (75, 8, 3, 3), jnp.float32) * 0.2,
         jnp.zeros((75,), jnp.float32)),
    ]
    np.testing.assert_allclose(np.asarray(pixel_conv(bp, feat_t, img_t)),
                               np.asarray(_pixel_conv_ref(bp, feat_t, img_t)),
                               rtol=3e-2, atol=3e-2)

    # 6) full KPN forward
    x = jax.random.uniform(k_x, (2, 3, 16, 16), jnp.float32)
    params = init_params(k_p)
    out = jax.jit(kpn_forward)(x, params)
    jax.block_until_ready(out)
    assert out.shape == (2, 3, 16, 16), out.shape
    assert np.all(np.isfinite(np.asarray(out)))
    print("KERNEL_OK")
</pallas_src>

<mosaic_0001>
module attributes {stable_mosaic.version = 11 : i64} {
  func.func @_conv_overscan_kernel(%arg0: i32, %arg1: i32, %arg2: memref<9x8x8xbf16, #tpu.memory_space<vmem>>, %arg3: memref<8x1xf32, #tpu.memory_space<vmem>>, %arg4: memref<1x1x8x54xbf16, #tpu.memory_space<vmem>>, %arg5: memref<1x1x8x27xbf16, #tpu.memory_space<vmem>>) attributes {dimension_semantics = [#tpu.dimension_semantics<parallel>, #tpu.dimension_semantics<parallel>], iteration_bounds = array<i64: 2, 3>, scalar_prefetch = 0 : i64, scratch_operands = 0 : i64, tpu.core_type = #tpu.core_type<tc>, window_params = [{pipeline_mode = #tpu.pipeline_mode<synchronous>, transform_indices = @transform_0, window_bounds = array<i64: 9, 8, 8>}, {pipeline_mode = #tpu.pipeline_mode<synchronous>, transform_indices = @transform_1, window_bounds = array<i64: 8, 1>}, {transform_indices = @transform_2, window_bounds = array<i64: 1, 1, 8, 54>}, {transform_indices = @transform_3, window_bounds = array<i64: 1, 1, 8, 27>}]} {
    %cst = arith.constant 0.000000e+00 : f32
    %0 = vector.broadcast %cst : f32 to vector<8x27xf32>
    %c0 = arith.constant 0 : index
    %c0_0 = arith.constant 0 : index
    %c0_1 = arith.constant 0 : index
    %c0_2 = arith.constant 0 : index
    %1 = vector.load %arg4[%c0, %c0_0, %c0_1, %c0_2] : memref<1x1x8x54xbf16, #tpu.memory_space<vmem>>, vector<1x1x8x27xbf16>
    %2 = vector.shape_cast %1 : vector<1x1x8x27xbf16> to vector<8x27xbf16>
    %c0_3 = arith.constant 0 : index
    %c0_4 = arith.constant 0 : index
    %c0_5 = arith.constant 0 : index
    %3 = vector.load %arg2[%c0_3, %c0_4, %c0_5] : memref<9x8x8xbf16, #tpu.memory_space<vmem>>, vector<1x8x8xbf16>
    %4 = vector.shape_cast %3 : vector<1x8x8xbf16> to vector<8x8xbf16>
    %cst_6 = arith.constant dense<0.000000e+00> : vector<8x27xf32>
    %5 = tpu.matmul %4, %2, %cst_6 {dimension_numbers = #tpu.dot_dimension_numbers<[1], [0], [0], [1], [0, 0, 1, 1], [], []>} : vector<8x8xbf16>, vector<8x27xbf16>, vector<8x27xf32> -> vector<8x27xf32>
    %6 = arith.addf %0, %5 : vector<8x27xf32>
    %c0_7 = arith.constant 0 : index
    %c0_8 = arith.constant 0 : index
    %c0_9 = arith.constant 0 : index
    %c1 = arith.constant 1 : index
    %7 = vector.load %arg4[%c0_7, %c0_8, %c0_9, %c1] : memref<1x1x8x54xbf16, #tpu.memory_space<vmem>>, vector<1x1x8x27xbf16>
    %8 = vector.shape_cast %7 : vector<1x1x8x27xbf16> to vector<8x27xbf16>
    %c1_10 = arith.constant 1 : index
    %c0_11 = arith.constant 0 : index
    %c0_12 = arith.constant 0 : index
    %9 = vector.load %arg2[%c1_10, %c0_11, %c0_12] : memref<9x8x8xbf16, #tpu.memory_space<vmem>>, vector<1x8x8xbf16>
    %10 = vector.shape_cast %9 : vector<1x8x8xbf16> to vector<8x8xbf16>
    %cst_13 = arith.constant dense<0.000000e+00> : vector<8x27xf32>
    %11 = tpu.matmul %10, %8, %cst_13 {dimension_numbers = #tpu.dot_dimension_numbers<[1], [0], [0], [1], [0, 0, 1, 1], [], []>} : vector<8x8xbf16>, vector<8x27xbf16>, vector<8x27xf32> -> vector<8x27xf32>
    %12 = arith.addf %6, %11 : vector<8x27xf32>
    %c0_14 = arith.constant 0 : index
    %c0_15 = arith.constant 0 : index
    %c0_16 = arith.constant 0 : index
    %c2 = arith.constant 2 : index
    %13 = vector.load %arg4[%c0_14, %c0_15, %c0_16, %c2] : memref<1x1x8x54xbf16, #tpu.memory_space<vmem>>, vector<1x1x8x27xbf16>
    %14 = vector.shape_cast %13 : vector<1x1x8x27xbf16> to vector<8x27xbf16>
    %c2_17 = arith.constant 2 : index
    %c0_18 = arith.constant 0 : index
    %c0_19 = arith.constant 0 : index
    %15 = vector.load %arg2[%c2_17, %c0_18, %c0_19] : memref<9x8x8xbf16, #tpu.memory_space<vmem>>, vector<1x8x8xbf16>
    %16 = vector.shape_cast %15 : vector<1x8x8xbf16> to vector<8x8xbf16>
    %cst_20 = arith.constant dense<0.000000e+00> : vector<8x27xf32>
    %17 = tpu.matmul %16, %14, %cst_20 {dimension_numbers = #tpu.dot_dimension_numbers<[1], [0], [0], [1], [0, 0, 1, 1], [], []>} : vector<8x8xbf16>, vector<8x27xbf16>, vector<8x27xf32> -> vector<8x27xf32>
    %18 = arith.addf %12, %17 : vector<8x27xf32>
    %c0_21 = arith.constant 0 : index
    %c0_22 = arith.constant 0 : index
    %c0_23 = arith.constant 0 : index
    %c9 = arith.constant 9 : index
    %19 = vector.load %arg4[%c0_21, %c0_22, %c0_23, %c9] : memref<1x1x8x54xbf16, #tpu.memory_space<vmem>>, vector<1x1x8x27xbf16>
    %20 = vector.shape_cast %19 : vector<1x1x8x27xbf16> to vector<8x27xbf16>
    %c3 = arith.constant 3 : index
    %c0_24 = arith.constant 0 : index
    %c0_25 = arith.constant 0 : index
    %21 = vector.load %arg2[%c3, %c0_24, %c0_25] : memref<9x8x8xbf16, #tpu.memory_space<vmem>>, vector<1x8x8xbf16>
    %22 = vector.shape_cast %21 : vector<1x8x8xbf16> to vector<8x8xbf16>
    %cst_26 = arith.constant dense<0.000000e+00> : vector<8x27xf32>
    %23 = tpu.matmul %22, %20, %cst_26 {dimension_numbers = #tpu.dot_dimension_numbers<[1], [0], [0], [1], [0, 0, 1, 1], [], []>} : vector<8x8xbf16>, vector<8x27xbf16>, vector<8x27xf32> -> vector<8x27xf32>
    %24 = arith.addf %18, %23 : vector<8x27xf32>
    %c0_27 = arith.constant 0 : index
    %c0_28 = arith.constant 0 : index
    %c0_29 = arith.constant 0 : index
    %c10 = arith.constant 10 : index
    %25 = vector.load %arg4[%c0_27, %c0_28, %c0_29, %c10] : memref<1x1x8x54xbf16, #tpu.memory_space<vmem>>, vector<1x1x8x27xbf16>
    %26 = vector.shape_cast %25 : vector<1x1x8x27xbf16> to vector<8x27xbf16>
    %c4 = arith.constant 4 : index
    %c0_30 = arith.constant 0 : index
    %c0_31 = arith.constant 0 : index
    %27 = vector.load %arg2[%c4, %c0_30, %c0_31] : memref<9x8x8xbf16, #tpu.memory_space<vmem>>, vector<1x8x8xbf16>
    %28 = vector.shape_cast %27 : vector<1x8x8xbf16> to vector<8x8xbf16>
    %cst_32 = arith.constant dense<0.000000e+00> : vector<8x27xf32>
    %29 = tpu.matmul %28, %26, %cst_32 {dimension_numbers = #tpu.dot_dimension_numbers<[1], [0], [0], [1], [0, 0, 1, 1], [], []>} : vector<8x8xbf16>, vector<8x27xbf16>, vector<8x27xf32> -> vector<8x27xf32>
    %30 = arith.addf %24, %29 : vector<8x27xf32>
    %c0_33 = arith.constant 0 : index
    %c0_34 = arith.constant 0 : index
    %c0_35 = arith.constant 0 : index
    %c11 = arith.constant 11 : index
    %31 = vector.load %arg4[%c0_33, %c0_34, %c0_35, %c11] : memref<1x1x8x54xbf16, #tpu.memory_space<vmem>>, vector<1x1x8x27xbf16>
    %32 = vector.shape_cast %31 : vector<1x1x8x27xbf16> to vector<8x27xbf16>
    %c5 = arith.constant 5 : index
    %c0_36 = arith.constant 0 : index
    %c0_37 = arith.constant 0 : index
    %33 = vector.load %arg2[%c5, %c0_36, %c0_37] : memref<9x8x8xbf16, #tpu.memory_space<vmem>>, vector<1x8x8xbf16>
    %34 = vector.shape_cast %33 : vector<1x8x8xbf16> to vector<8x8xbf16>
    %cst_38 = arith.constant dense<0.000000e+00> : vector<8x27xf32>
    %35 = tpu.matmul %34, %32, %cst_38 {dimension_numbers = #tpu.dot_dimension_numbers<[1], [0], [0], [1], [0, 0, 1, 1], [], []>} : vector<8x8xbf16>, vector<8x27xbf16>, vector<8x27xf32> -> vector<8x27xf32>
    %36 = arith.addf %30, %35 : vector<8x27xf32>
    %c0_39 = arith.constant 0 : index
    %c0_40 = arith.constant 0 : index
    %c0_41 = arith.constant 0 : index
    %c18 = arith.constant 18 : index
    %37 = vector.load %arg4[%c0_39, %c0_40, %c0_41, %c18] : memref<1x1x8x54xbf16, #tpu.memory_space<vmem>>, vector<1x1x8x27xbf16>
    %38 = vector.shape_cast %37 : vector<1x1x8x27xbf16> to vector<8x27xbf16>
    %c6 = arith.constant 6 : index
    %c0_42 = arith.constant 0 : index
    %c0_43 = arith.constant 0 : index
    %39 = vector.load %arg2[%c6, %c0_42, %c0_43] : memref<9x8x8xbf16, #tpu.memory_space<vmem>>, vector<1x8x8xbf16>
    %40 = vector.shape_cast %39 : vector<1x8x8xbf16> to vector<8x8xbf16>
    %cst_44 = arith.constant dense<0.000000e+00> : vector<8x27xf32>
    %41 = tpu.matmul %40, %38, %cst_44 {dimension_numbers = #tpu.dot_dimension_numbers<[1], [0], [0], [1], [0, 0, 1, 1], [], []>} : vector<8x8xbf16>, vector<8x27xbf16>, vector<8x27xf32> -> vector<8x27xf32>
    %42 = arith.addf %36, %41 : vector<8x27xf32>
    %c0_45 = arith.constant 0 : index
    %c0_46 = arith.constant 0 : index
    %c0_47 = arith.constant 0 : index
    %c19 = arith.constant 19 : index
    %43 = vector.load %arg4[%c0_45, %c0_46, %c0_47, %c19] : memref<1x1x8x54xbf16, #tpu.memory_space<vmem>>, vector<1x1x8x27xbf16>
    %44 = vector.shape_cast %43 : vector<1x1x8x27xbf16> to vector<8x27xbf16>
    %c7 = arith.constant 7 : index
    %c0_48 = arith.constant 0 : index
    %c0_49 = arith.constant 0 : index
    %45 = vector.load %arg2[%c7, %c0_48, %c0_49] : memref<9x8x8xbf16, #tpu.memory_space<vmem>>, vector<1x8x8xbf16>
    %46 = vector.shape_cast %45 : vector<1x8x8xbf16> to vector<8x8xbf16>
    %cst_50 = arith.constant dense<0.000000e+00> : vector<8x27xf32>
    %47 = tpu.matmul %46, %44, %cst_50 {dimension_numbers = #tpu.dot_dimension_numbers<[1], [0], [0], [1], [0, 0, 1, 1], [], []>} : vector<8x8xbf16>, vector<8x27xbf16>, vector<8x27xf32> -> vector<8x27xf32>
    %48 = arith.addf %42, %47 : vector<8x27xf32>
    %c0_51 = arith.constant 0 : index
    %c0_52 = arith.constant 0 : index
    %c0_53 = arith.constant 0 : index
    %c20 = arith.constant 20 : index
    %49 = vector.load %arg4[%c0_51, %c0_52, %c0_53, %c20] : memref<1x1x8x54xbf16, #tpu.memory_space<vmem>>, vector<1x1x8x27xbf16>
    %50 = vector.shape_cast %49 : vector<1x1x8x27xbf16> to vector<8x27xbf16>
    %c8 = arith.constant 8 : index
    %c0_54 = arith.constant 0 : index
    %c0_55 = arith.constant 0 : index
    %51 = vector.load %arg2[%c8, %c0_54, %c0_55] : memref<9x8x8xbf16, #tpu.memory_space<vmem>>, vector<1x8x8xbf16>
    %52 = vector.shape_cast %51 : vector<1x8x8xbf16> to vector<8x8xbf16>
    %cst_56 = arith.constant dense<0.000000e+00> : vector<8x27xf32>
    %53 = tpu.matmul %52, %50, %cst_56 {dimension_numbers = #tpu.dot_dimension_numbers<[1], [0], [0], [1], [0, 0, 1, 1], [], []>} : vector<8x8xbf16>, vector<8x27xbf16>, vector<8x27xf32> -> vector<8x27xf32>
    %54 = arith.addf %48, %53 : vector<8x27xf32>
    %c0_57 = arith.constant 0 : index
    %c0_58 = arith.constant 0 : index
    %55 = vector.load %arg3[%c0_57, %c0_58] : memref<8x1xf32, #tpu.memory_space<vmem>>, vector<8x1xf32>
    %56 = vector.broadcast %55 : vector<8x1xf32> to vector<8x27xf32>
    %57 = arith.addf %54, %56 : vector<8x27xf32>
    %cst_59 = arith.constant 0.000000e+00 : f32
    %58 = vector.broadcast %cst_59 : f32 to vector<8x27xf32>
    %59 = arith.maximumf %57, %58 : vector<8x27xf32>
    %60 = arith.truncf %59 : vector<8x27xf32> to vector<8x27xbf16>
    %c0_60 = arith.constant 0 : index
    %c0_61 = arith.constant 0 : index
    %c0_62 = arith.constant 0 : index
    %c0_63 = arith.constant 0 : index
    %61 = vector.load %arg5[%c0_60, %c0_61, %c0_62, %c0_63] : memref<1x1x8x27xbf16, #tpu.memory_space<vmem>>, vector<1x1x8x27xbf16>
    %62 = vector.shape_cast %61 : vector<1x1x8x27xbf16> to vector<8x27xbf16>
    %63 = vector.shape_cast %60 : vector<8x27xbf16> to vector<1x1x8x27xbf16>
    tpu.vector_store %arg5[%c0_60, %c0_61, %c0_62, %c0_63], %63 {strides = array<i32>} : memref<1x1x8x27xbf16, #tpu.memory_space<vmem>>, vector<1x1x8x27xbf16>,
    return
  }
  func.func @transform_0(%arg0: i32, %arg1: i32) -> (i32, i32, i32) {
    %c0_i32 = arith.constant 0 : i32
    %c0_i32_0 = arith.constant 0 : i32
    %c0_i32_1 = arith.constant 0 : i32
    %c0_i32_2 = arith.constant 0 : i32
    return %c0_i32, %c0_i32_0, %c0_i32_1 : i32, i32, i32
  }
  func.func @transform_1(%arg0: i32, %arg1: i32) -> (i32, i32) {
    %c0_i32 = arith.constant 0 : i32
    %c0_i32_0 = arith.constant 0 : i32
    %c0_i32_1 = arith.constant 0 : i32
    return %c0_i32, %c0_i32_0 : i32, i32
  }
  func.func @transform_2(%arg0: i32, %arg1: i32) -> (i32, i32, i32, i32) {
    %c0_i32 = arith.constant 0 : i32
    %c0_i32_0 = arith.constant 0 : i32
    %c0_i32_1 = arith.constant 0 : i32
    return %arg0, %arg1, %c0_i32, %c0_i32_0 : i32, i32, i32, i32
  }
  func.func @transform_3(%arg0: i32, %arg1: i32) -> (i32, i32, i32, i32) {
    %c0_i32 = arith.constant 0 : i32
    %c0_i32_0 = arith.constant 0 : i32
    %c0_i32_1 = arith.constant 0 : i32
    return %arg0, %arg1, %c0_i32, %c0_i32_0 : i32, i32, i32, i32
  }
}

</mosaic_0001>

<bundles_post_ra>
// kernel: tpu_custom_call.1
= control target key start
LH: loop header
LB: loop body
LE: loop exit
PB: predicated region body
PF: predicated region fallthrough
CT: control target
= control target key end

     0   :  { %8 = vsyncpa [#allocation3], 0  ;;  %s1287_s0 = inlined_call_operand.vmem [shape: bf16[9,8,8], index: 0, kind: input, shape index: {}]   ;;  %s1288_s1 = inlined_call_operand.vmem [shape: f32[8,1], index: 1, kind: input, shape index: {}]   ;;  %s1289_s2 = inlined_call_operand.vmem [shape: bf16[2,3,8,54], index: 2, kind: input, shape index: {}]   ;;  %s1290_s3 = inlined_call_operand.hbm [shape: bf16[2,3,8,27], index: 3, kind: output, shape index: {}]  }
   0x1   :  { %10 = vsyncpa [#allocation3 + $0x1], 0  ;;  %s1075_s12 = smov 0   ;;  %s1077_s13 = smov 0  }
   0x2   :  { %s1079_s14 = smov 0   ;;  %s1081_s15 = smov 0  }
   0x3   :  { %s1083_s16 = smov 0   ;;  %s1085_s17 = smov 0  }
   0x4   :  { %s1087_s18 = smov 0   ;;  %s1089_s19 = smov 0  }
   0x5 LB: > { %s760_s20 = sadd.s32 4294967295, %s1041_s19   ;;  %s761_s21 = sadd.s32 4294967294, %s1041_s19   ;;  %s1041_s19 = sphi %s1089_s19, %s16_s19   ;;  %s1037_s18 = sphi %s1087_s18, %s1299_s18   ;;  %s1033_s17 = sphi %s1085_s17, %s1298_s17   ;;  %s1029_s16 = sphi %s1083_s16, %s1297_s16   ;;  %s1025_s15 = sphi %s1081_s15, %s1296_s15   ;;  %s1021_s14 = sphi %s1079_s14, %s1295_s14   ;;  %s1017_s13 = sphi %s1077_s13, %s1294_s13   ;;  %s1013_s12 = sphi %s1075_s12, %s1293_s12  }
   0x6   : > { %s25_s22 = sadd.s32 1, %s1033_s17  ;;  %s28_s23 = sadd.s32 1, %s1037_s18 }
   0x7   : > { %p26_p0 = scmp.ge.s32.totalorder %s25_s22, 3  ;;  %p117_p1 = scmp.ne.s32.totalorder %s1021_s14, %s1017_s13 }
   0x8   : > { %p118_p2 = scmp.eq.s32.totalorder %s760_s20, 5  ;;  %p123_p5 = scmp.ne.s32.totalorder %s1017_s13, %s1013_s12 }
   0x9   : > { %s1301_s22 = smov (%p26_p0, %s25_s22), 0  ;;  %s1303_s23 = smov (!%p26_p0, %s28_s23), %s1037_s18 }
   0xa   : > { %s103_s24 = ssub.s32 %s1033_s17, %s1301_s22  ;;  %p1126_p3 = por %p118_p2, %p117_p1 }
   0xb   : > { %p30_p4 = scmp.ge.s32.totalorder %s1303_s23, 2  ;;  %p124_p6 = scmp.eq.s32.totalorder %s761_s21, 5 }
   0xc   : > { %p764_p7 = scmp.ge.s32.totalorder %s1041_s19, 1  ;;  %p159_p9 = scmp.lt.s32.totalorder %s1041_s19, 7 }
   0xd   : > { %s1305_s23 = smov (%p30_p4, %s1303_s23), 0  ;;  %p1135_p8 = por %p124_p6, %p123_p5 }
   0xe   : > { %s102_s27 = ssub.s32 %s1037_s18, %s1305_s23  ;;  %s107_s28 = sadd.s32 1, %s1021_s14 }
   0xf   : > { %s104_s29 = sor.u32 %s103_s24, %s102_s27  ;;  %p160_p10 = pnand %p764_p7, %p159_p9 }
  0x10   : > { %p105_p11 = scmp.eq.s32.totalorder %s104_s29, 0  ;;  %p186_p12 = scmp.lt.s32.totalorder (!%p160_p10), %s1029_s16, 1  ;;  %v1043_v0 = vmov (!%p160_p10), 0.0   ;;  %vm1044_vm0 = vmmov (!%p160_p10), 0   ;;  %vm208_vm1 = vcmask (!%p160_p10), 1043456   ;;  %vm204_vm2 = vcmask (!%p160_p10), 64512  }
  0x11   : > { %163 = sbr.rel (%p160_p10) target bundleno = 419 (0x1a3), region = 32  ;;  %p188_p13 = scmp.lt.s32.totalorder (!%p160_p10), %s1025_s15, 2  ;;  %807 = vmatprep.subr.bf16.mxu0 (!%p160_p10), %v1043_v0  ;;  %813 = vmatprep.subr.bf16.mxu1 (!%p160_p10), %v1043_v0  ;;  %v196_v4 = vld [vmem:[%s1287_s0] sm:$0xf] (!%p160_p10)  ;;  %v1053_v6 = vmov (!%p160_p10), 0   ;;  %vm664_vm3 = vcmask (!%p160_p10), 216064  }
  0x12   : > { %s1144_s30 = scalar_select %p105_p11, %s1021_s14, %s107_s28  }
  0x13   : > { %809 = vmatprep.mubr.msk.bf16.mxu0 (!%p160_p10), %vm1044_vm0, %v1043_v0  ;;  %815 = vmatprep.mubr.msk.bf16.mxu1 (!%p160_p10), %vm1044_vm0, %v1043_v0  ;;  %s1045_s24 = smov (!%p160_p10), 127   ;;  %s1046_s27 = smov (!%p160_p10), 119   ;;  %v655_v5 = vld [vmem:[%s1288_s1] sm:$0xff] (!%p160_p10)  ;;  %v773_v12 = vld [vmem:[%s1287_s0 + $0xc] sm:$0xf] (!%p160_p10) }
  0x14   : > { %s1047_s28 = smov (!%p160_p10), 126   ;;  %s1048_s29 = smov (!%p160_p10), 118   ;;  %945 = vset.pattern.permute.xlu0 (!%p160_p10), %v1053_v6  ;;  %v767_v11 = vld [vmem:[%s1287_s0 + $0x4] sm:$0xf] (!%p160_p10)  ;;  %v771_v18 = vld [vmem:[%s1287_s0 + $0x8] sm:$0xf] (!%p160_p10) }
  0x15   : > { %v777_v19 = vld [vmem:[%s1287_s0 + $0x14] sm:$0xf] (!%p160_p10)  ;;  %v775_v24 = vld [vmem:[%s1287_s0 + $0x10] sm:$0xf] (!%p160_p10)  ;;  %v781_v25 = vld [vmem:[%s1287_s0 + $0x1c] sm:$0xf] (!%p160_p10) }
  0x16   : > { %v779_v28 = vld [vmem:[%s1287_s0 + $0x18] sm:$0xf] (!%p160_p10)  ;;  %v783_v30 = vld [vmem:[%s1287_s0 + $0x20] sm:$0xf] (!%p160_p10)  ;;  %s183_s20 = sand.u32 (!%p160_p10), 1, %s1017_s13   ;;  %s862_s21 = smul.u32 (!%p160_p10), 3, %s1029_s16 }
  0x18   : > { %s187_s4 = scalar_select %p186_p12, %s1029_s16, 1 }
  0x19   : > { %s189_s5 = scalar_select %p188_p13, %s1025_s15, 2 }
  0x1a   : > { %s861_s6 = smul.u32 3, %s187_s4  ;;  %s1049_s4 = smov 117  }
  0x1c   : > { %s191_s7 = sadd.s32 %s861_s6, %s189_s5  ;;  %s1050_s5 = smov 110  }
  0x1d   : > { %s766_s8 = sshll.u32 %s191_s7, 2  ;;  %s1051_s6 = smov 109  }
  0x1e   : > { %s193_s11 = scalar_lea.vmem %s1289_s2, %s766_s8  ;;  %s1052_s7 = smov 108  }
  0x1f   : > { %v195_v1 = vld [vmem:[%s193_s11] sm:$0xf]  ;;  %s1054_s8 = smov [#allocation2]  }
  0x20   : > { %v768_v2 = vcombine.low %v195_v1, %v195_v1  ;;  %v256_v3 = vsel %vm208_vm1, %v195_v1, 0  ;;  %s951_s9 = sshll.u32 %s1054_s8, 4  ;;  %s952_s9 = int_to_ptr.vmem [resolvable:$false] %s951_s9 }
  0x21   : > { %814 = vmatpush3.bf16.msra.mxu1 %v256_v3  ;;  %s953_s10 = scalar_lea.vmem %s952_s9, 128 }
  0x22   : > { %202 = vrot.lane.b32.xlu0 %v768_v2, %s1045_s24  ;;  %351 = vrot.lane.b32.xlu1 %v768_v2, %s1046_s27  ;;  %s765_s24 = sshll.u32 %s183_s20, 2  ;;  %s678_s27 = sadd.s32 %s1025_s15, %s862_s21 }
  0x23   : > { %825 = vmatprep.subr.bf16.mxu1 %v1043_v0  ;;  %s667_s15 = scalar_lea.sflag [#allocation3], %s183_s20 }
  0x24   : > { %816 = vmatmul.mubr.msk.bf16.vlgmr.msra.gmra.mrb[0].mxu1 %vm204_vm2, %v196_v4 }
  0x25   : > { %827 = vmatprep.mubr.msk.bf16.mxu1 %vm1044_vm0, %v1043_v0 }
  0x26   : > { %300 = vrot.lane.b32.xlu0 %v768_v2, %s1047_s28  ;;  %402 = vrot.lane.b32.xlu1 %v768_v2, %s1048_s29  ;;  %s786_s28 = sshll.u32 %s678_s27, 6  ;;  %s185_s29 = scalar_lea.vmem [#allocation2], %s765_s24 }
  0x27   : > { %s1234_s16 = scalar_lea.hbm %s1290_s3, %s786_s28 }
  0x2a   : > { %453 = vrot.lane.b32.xlu0 %v768_v2, %s1049_s4  ;;  %504 = vrot.lane.b32.xlu1 %v768_v2, %s1050_s5  ;;  %s682_s4 = sshll.u32 %s185_s29, 4  ;;  %s1236_s4 = int_to_ptr.vmem [resolvable:$true] %s682_s4 }
  0x2b   : > { %p954_p4 = scmp.lt.s32.totalorder %s1236_s4, %s952_s9 }
  0x2e   : > { %555 = vrot.lane.b32.xlu0 %v768_v2, %s1051_s6  ;;  %606 = vrot.lane.b32.xlu1 %v768_v2, %s1052_s7  ;;  %s947_s7 = scalar_lea.vmem %s1236_s4, 64 }
  0x2f   : > { %p948_p0 = scmp.ne.s32.totalorder %s1236_s4, %s947_s7  ;;  %p955_p5 = scmp.lt.s32.totalorder %s953_s10, %s947_s7 }
  0x31   : > { %p949_p1 = pnand %p948_p0, %p1126_p3  ;;  %p956_p6 = por %p955_p5, %p954_p4 }
  0x32   : > { %658 = vperm.xlu0 %945, %v655_v5  }
  0x33   : > { %p950_p2 = pneg %p949_p1 }
  0x35   : > { %p957_p7 = pnand %p956_p6, %p950_p2 }
  0x94   : > { %v203_v7 = vpop.permute.xlu0 %202  ;;  %v352_v8 = vpop.permute.xlu1 %351 }
  0x95   : > { %v210_v9 = vsel %vm208_vm1, %v203_v7, 0  ;;  %v357_v10 = vsel %vm208_vm1, %v352_v8, 0 }
  0x96   : > { %808 = vmatpush3.bf16.msra.mxu0 %v210_v9  ;;  %826 = vmatpush3.bf16.msra.mxu1 %v357_v10 }
  0x97   : > { %819 = vmatprep.subr.bf16.mxu0 %v1043_v0  ;;  %837 = vmatprep.subr.bf16.mxu1 %v1043_v0 }
  0x98   : > { %v301_v13 = vpop.permute.xlu0 %300  ;;  %v403_v15 = vpop.permute.xlu1 %402 }
  0x99   : > { %v306_v14 = vsel %vm208_vm1, %v301_v13, 0  ;;  %810 = vmatmul.mubr.msk.bf16.vlgmr.msra.gmra.mrb[0].mxu0 %vm204_vm2, %v767_v11  ;;  %828 = vmatmul.mubr.msk.bf16.vlgmr.msra.gmra.mrb[4].mxu1 %vm204_vm2, %v773_v12  ;;  %v408_v20 = vsel %vm208_vm1, %v403_v15, 0 }
  0x9a   : > { %820 = vmatpush3.bf16.msra.mxu0 %v306_v14  ;;  %821 = vmatprep.mubr.msk.bf16.mxu0 %vm1044_vm0, %v1043_v0 }
  0x9b   : > { %831 = vmatprep.subr.bf16.mxu0 %v1043_v0  ;;  %839 = vmatprep.mubr.msk.bf16.mxu1 %vm1044_vm0, %v1043_v0 }
  0x9c   : > { %v454_v16 = vpop.permute.xlu0 %453  ;;  %v505_v23 = vpop.permute.xlu1 %504 }
  0x9d   : > { %v459_v17 = vsel %vm208_vm1, %v454_v16, 0  ;;  %v510_v26 = vsel %vm208_vm1, %v505_v23, 0 }
  0x9e   : > { %838 = vmatpush3.bf16.msra.mxu1 %v459_v17 }
  0x9f   : > { %849 = vmatprep.subr.bf16.mxu1 %v1043_v0 }
  0xa0   : > { %v556_v21 = vpop.permute.xlu0 %555  ;;  %v607_v27 = vpop.permute.xlu1 %606 }
  0xa1   : > { %822 = vmatmul.mubr.msk.bf16.vlgmr.msra.gmra.mrb[4].mxu0 %vm204_vm2, %v771_v18  ;;  %840 = vmatmul.mubr.msk.bf16.vlgmr.msra.gmra.mrb[8].mxu1 %vm204_vm2, %v777_v19  ;;  %v561_v22 = vsel %vm208_vm1, %v556_v21, 0  ;;  %v612_v29 = vsel %vm208_vm1, %v607_v27, 0 }
  0xa2   : > { %832 = vmatpush3.bf16.msra.mxu0 %v408_v20  ;;  %833 = vmatprep.mubr.msk.bf16.mxu0 %vm1044_vm0, %v1043_v0 }
  0xa3   : > { %843 = vmatprep.subr.bf16.mxu0 %v1043_v0  ;;  %850 = vmatpush3.bf16.msra.mxu1 %v561_v22 }
  0xa4   : > { %851 = vmatprep.mubr.msk.bf16.mxu1 %vm1044_vm0, %v1043_v0 }
  0xa9   : > { %834 = vmatmul.mubr.msk.bf16.vlgmr.msra.gmra.mrb[8].mxu0 %vm204_vm2, %v775_v24  ;;  %852 = vmatmul.mubr.msk.bf16.vlgmr.msra.gmra.mrb[12].mxu1 %vm204_vm2, %v781_v25 }
  0xaa   : > { %844 = vmatpush3.bf16.msra.mxu0 %v510_v26  ;;  %845 = vmatprep.mubr.msk.bf16.mxu0 %vm1044_vm0, %v1043_v0 }
  0xab   : > { %855 = vmatprep.subr.bf16.mxu0 %v1043_v0 }
  0xb1   : > { %846 = vmatmul.mubr.msk.bf16.vlgmr.msra.gmra.mrb[12].mxu0 %vm204_vm2, %v779_v28  ;;  %v659_v7 = vpop.permute.xlu0 %658 }
  0xb2   : > { %856 = vmatpush3.bf16.msra.mxu0 %v612_v29  ;;  %857 = vmatprep.mubr.msk.bf16.mxu0 %vm1044_vm0, %v1043_v0 }
  0xb9   : > { %858 = vmatmul.mubr.msk.bf16.vlgmr.msra.gmra.mrb[16].mxu0 %vm204_vm2, %v783_v30 }
  0xf7   : > { %v292_v31 = vpop.f32.mrb[0].mxu1 }
  0xf8   : > { %v817_v32 = vpop.f32.mrb[1].mxu1 }
  0xf9   : > { %v295_v33 = vpop.f32.mrb[2].mxu1 }
  0xfa   : > { %v818_v34 = vpop.f32.mrb[3].mxu1 }
 0x16c   : > { %v246_v35 = vpop.f32.mrb[0].mxu0  ;;  %v393_v36 = vpop.f32.mrb[4].mxu1 }
 0x16d   : > { %v811_v37 = vpop.f32.mrb[1].mxu0  ;;  %v293_v38 = vadd.f32 %v292_v31, %v246_v35  ;;  %v829_v39 = vpop.f32.mrb[5].mxu1 }
 0x16e   : > { %v249_v40 = vpop.f32.mrb[2].mxu0  ;;  %v396_v41 = vpop.f32.mrb[6].mxu1 }
 0x16f   : > { %v812_v42 = vpop.f32.mrb[3].mxu0  ;;  %v830_v43 = vpop.f32.mrb[7].mxu1 }
 0x174   : > { %v342_v44 = vpop.f32.mrb[4].mxu0  ;;  %v495_v45 = vpop.f32.mrb[8].mxu1 }
 0x175   : > { %v348_v46 = vadd.f32 %v342_v44, %v293_v38  ;;  %v823_v47 = vpop.f32.mrb[5].mxu0  ;;  %v841_v48 = vpop.f32.mrb[9].mxu1 }
 0x176   : > { %v345_v49 = vpop.f32.mrb[6].mxu0  ;;  %v498_v50 = vpop.f32.mrb[10].mxu1 }
 0x177   : > { %v399_v51 = vadd.f32 %v393_v36, %v348_v46  ;;  %v824_v52 = vpop.f32.mrb[7].mxu0  ;;  %v842_v53 = vpop.f32.mrb[11].mxu1 }
 0x17c   : > { %v444_v54 = vpop.f32.mrb[8].mxu0  ;;  %v597_v55 = vpop.f32.mrb[12].mxu1 }
 0x17d   : > { %v450_v56 = vadd.f32 %v444_v54, %v399_v51  ;;  %v835_v57 = vpop.f32.mrb[9].mxu0  ;;  %v853_v58 = vpop.f32.mrb[13].mxu1 }
 0x17e   : > { %v447_v59 = vpop.f32.mrb[10].mxu0  ;;  %v600_v60 = vpop.f32.mrb[14].mxu1 }
 0x17f   : > { %v501_v61 = vadd.f32 %v495_v45, %v450_v56  ;;  %v836_v62 = vpop.f32.mrb[11].mxu0  ;;  %v854_v63 = vpop.f32.mrb[15].mxu1 }
 0x184   : > { %v546_v0 = vpop.f32.mrb[12].mxu0 }
 0x185   : > { %v552_v1 = vadd.f32 %v546_v0, %v501_v61  ;;  %v847_v2 = vpop.f32.mrb[13].mxu0 }
 0x186   : > { %v549_v3 = vpop.f32.mrb[14].mxu0 }
 0x187   : > { %v603_v4 = vadd.f32 %v597_v55, %v552_v1  ;;  %v848_v5 = vpop.f32.mrb[15].mxu0 }
 0x18c   : > { %v648_v6 = vpop.f32.mrb[16].mxu0 }
 0x18d   : > { %v654_v8 = vadd.f32 %v648_v6, %v603_v4  ;;  %v859_v9 = vpop.f32.mrb[17].mxu0 }
 0x18e   : > { %v651_v10 = vpop.f32.mrb[18].mxu0 }
 0x18f   : > { %v661_v11 = vadd.f32 %v659_v7, %v654_v8  ;;  %v860_v12 = vpop.f32.mrb[19].mxu0 }
 0x191   : > { %v662_v13 = vmax.f32 %v661_v11, 0.0 }
 0x193   : > { %v663_v14 = vpack.c.bf16 %v662_v13, %v662_v13 }
 0x195   : > { %665 = vst.msk [vmem:[%s185_s29] sm:$0xf] %vm664_vm3, %v663_v14 }
 0x196   : > { %960 = shalt.err (!%p957_p7)
}
 0x197   : > { %s961_s11 = scalar_lea.hbm %s1234_s16, 64  ;;  %s965_s24 = scalar_lea.hbm %s1290_s3, 384 }
 0x198   : > { %p962_p9 = scmp.ne.s32.totalorder %s1234_s16, %s961_s11  ;;  %p966_p12 = scmp.lt.u32.totalorder %s1234_s16, %s1290_s3 }
 0x199   : > { %p967_p13 = scmp.lt.u32.totalorder %s965_s24, %s961_s11  ;;  %p969_p1 = scmp.lt.u32.totalorder %s961_s11, %s1234_s16 }
 0x19a   : > { %p963_p10 = pnand %p962_p9, %p1126_p3 }
 0x19b   : > { %p968_p0 = por %p967_p13, %p966_p12 }
 0x19c   : > { %p964_p11 = pneg %p963_p10 }
 0x19d   : > { %p970_p2 = por %p969_p1, %p968_p0 }
 0x19f   : > { %p971_p4 = pnand %p970_p2, %p964_p11 }
 0x1a1   : > { %974 = shalt.err (!%p971_p4)
}
 0x1a2   : > { %863 = dma.vmem_to_hbm [thread:$0]  (%p1126_p3), %s1236_s4, 64, %s1234_s16, %s667_s15  }
 0x1a3 PF: > { %p869_p5 = scmp.ge.s32.totalorder %s1041_s19, 2  ;;  %s694_s29 = sand.u32 1, %s1013_s12  }
 0x1a4   : > { %s695_s5 = scalar_lea.sflag [#allocation3], %s694_s29 }
 0x1a5   : > { %p866_p6 = pnand %p869_p5, %p1135_p8 }
 0x1a7   : > { %1008 = dma.done.wait (!%p866_p6), %s695_s5, 64  }
 0x1a8   : > { %1010 = vsyncadd (!%p866_p6), %s695_s5, 4294967232  ;;  %s16_s19 = sadd.s32 1, %s1041_s19   ;;  %s1293_s12 = smov %s1017_s13 }
 0x1a9   : > { %p13_p7 = scmp.ge.s32.totalorder %s16_s19, 8   ;;  %s1294_s13 = smov %s1021_s14 }
 0x1aa   : > { %s1295_s14 = smov %s1144_s30  ;;  %s1296_s15 = smov %s1033_s17 }
 0x1ab   : > { %s1297_s16 = smov %s1037_s18  ;;  %s1298_s17 = smov %s1301_s22 }
 0x1ac   : > { %s1299_s18 = smov %s1305_s23  ;;  %15 = sbr.rel (!%p13_p7) target bundleno = 5 (0x5), region = 75 }
 0x1b3   :  { %700 = vsyncpa [#allocation3], 1 }
 0x1b4   :  { %702 = vsyncpa [#allocation3 + $0x1], 1 }

</bundles_post_ra>
